<compile_context>
chip_gen: v7x
topology: tpu7x:2x2x1
jax: 0.10.0
libtpu: 0.0.40
codegen_flags: <defaults>
</compile_context>

<pallas_src>
import jax
import jax.numpy as jnp
from jax.experimental import pallas as pl
from jax.experimental.pallas import tpu as pltpu

_LANE = 128
_SUBLANE = 8


def _round_up(x, m):
    return ((x + m - 1) // m) * m


def _slot_classifier_kernel(x_ref, w_ref, b_ref, o_ref):
    # Hot path: one MXU matmul (f32 accumulation) + broadcast bias add (VPU).
    acc = jnp.dot(x_ref[...], w_ref[...], preferred_element_type=jnp.float32)
    o_ref[...] = (acc + b_ref[...]).astype(o_ref.dtype)


def slot_classifier_forward(x, weight, bias, *, row_block=4096, use_pallas=None):
    """SlotClassifier forward: dropout(p=0.0)(x) @ weight + bias.

    x:      [..., D]
    weight: [D, N]   (nn.Linear weight, pre-transposed once at param init)
    bias:   [N]
    returns [..., N]
    """
    D, N = weight.shape
    lead = x.shape[:-1]
    assert x.shape[-1] == D

    M = 1
    for s in lead:
        M *= s

    # Small-M fallback (review item): a standalone pallas_call at tiny shapes
    # is dominated by per-call overhead; let XLA fuse the dot instead.
    if use_pallas is None:
        use_pallas = M >= 2048
    if M == 0 or not use_pallas:
        return x @ weight + bias

    x2 = x.reshape(M, D)
    b2 = bias.reshape(1, N)  # zero-copy metadata reshape

    # Row tile: as large as possible (per-grid-step overhead ~0.35us) while
    # keeping double-buffered x + out tiles well under scoped VMEM on every
    # generation (v7x: 32 MiB scoped default / 64 MiB physical).  VMEM
    # lane-pads the last dim to 128, so budget with padded widths.
    d_vmem = _round_up(D, _LANE)
    n_vmem = _round_up(N, _LANE)
    bytes_per_row = 2 * x.dtype.itemsize * (d_vmem + n_vmem)  # double-buffered
    vmem_budget = 16 * 1024 * 1024
    tb_cap = max(_SUBLANE, (vmem_budget // bytes_per_row) // _SUBLANE * _SUBLANE)
    tb = max(_SUBLANE, (min(row_block, tb_cap) // _SUBLANE) * _SUBLANE)
    if M <= tb:
        # Full-extent row block is legal for any M (equals the full array dim).
        tb = M

    # pl.cdiv grid: no wrapper-side row padding.  For a partial last block,
    # Pallas pads OOB reads (values unused in valid rows: the matmul is
    # row-independent) and discards OOB output writes.
    grid = (pl.cdiv(M, tb),)

    cost = pl.CostEstimate(
        flops=2 * M * D * N,
        transcendentals=0,
        bytes_accessed=(x.dtype.itemsize * M * (D + N)
                        + weight.dtype.itemsize * D * N
                        + bias.dtype.itemsize * N),
    )

    out = pl.pallas_call(
        _slot_classifier_kernel,
        out_shape=jax.ShapeDtypeStruct((M, N), x.dtype),
        grid=grid,
        in_specs=[
            pl.BlockSpec((tb, D), lambda i: (i, 0)),   # x rows: tiled + pipelined
            pl.BlockSpec((D, N), lambda i: (0, 0)),    # weight: grid-invariant, VMEM-resident
            pl.BlockSpec((1, N), lambda i: (0, 0)),    # bias:   grid-invariant
        ],
        # Unpadded output block: N equals the full array dim -> legal shape,
        # and HBM writeback is only useful bytes (no lane padding, no slice).
        out_specs=pl.BlockSpec((tb, N), lambda i: (i, 0)),
        compiler_params=pltpu.CompilerParams(
            # Shards the row grid across v7x's 2 TensorCores when grid > 1.
            dimension_semantics=("parallel",),
        ),
        cost_estimate=cost,
    )(x2, weight, b2)

    return out.reshape(*lead, N)


if __name__ == "__main__":
    # Small shapes consistent with SlotClassifier usage (per-token slot logits):
    # batch=2, seq=8, hidden=32, num_slot_labels=8.
    B, S, D, N = 2, 8, 32, 8

    key = jax.random.PRNGKey(0)
    kx, kw, kb = jax.random.split(key, 3)

    x = jax.random.normal(kx, (B, S, D), dtype=jnp.float32)
    # Deterministic params (mimics nn.Linear's uniform init scale);
    # weight stored as [D, N] (transposed once from PyTorch's [N, D]).
    bound = 1.0 / (D ** 0.5)
    weight = jax.random.uniform(kw, (D, N), minval=-bound, maxval=bound,
                                dtype=jnp.float32)
    bias = jax.random.uniform(kb, (N,), minval=-bound, maxval=bound,
                              dtype=jnp.float32)

    ref = x @ weight + bias

    # 1) Forced Pallas path at the demo shape (single full-extent row block).
    out = jax.block_until_ready(
        slot_classifier_forward(x, weight, bias, use_pallas=True))
    assert out.shape == (B, S, N)
    assert jnp.allclose(out, ref, atol=1e-5, rtol=1e-5)

    # 2) Multi-step grid with a non-divisible row tail (M=18, tb=8 -> grid=3):
    #    exercises the cdiv grid + edge-block masking that replaced wrapper pads.
    x_tail = jax.random.normal(kx, (2, 9, D), dtype=jnp.float32)
    out_tail = jax.block_until_ready(
        slot_classifier_forward(x_tail, weight, bias, use_pallas=True, row_block=8))
    ref_tail = x_tail @ weight + bias
    assert out_tail.shape == (2, 9, N)
    assert jnp.allclose(out_tail, ref_tail, atol=1e-5, rtol=1e-5)

    # 3) Auto dispatch: tiny M falls back to the XLA-fused dot (same numerics).
    out_auto = jax.block_until_ready(slot_classifier_forward(x, weight, bias))
    assert jnp.allclose(out_auto, ref, atol=1e-5, rtol=1e-5)

    print("KERNEL_OK")
</pallas_src>

<mosaic_0001>
module attributes {stable_mosaic.version = 11 : i64} {
  func.func @_slot_classifier_kernel(%arg0: i32, %arg1: memref<16x32xf32, #tpu.memory_space<vmem>>, %arg2: memref<32x8xf32, #tpu.memory_space<vmem>>, %arg3: memref<1x8xf32, #tpu.memory_space<vmem>>, %arg4: memref<16x8xf32, #tpu.memory_space<vmem>>) attributes {dimension_semantics = [#tpu.dimension_semantics<parallel>], iteration_bounds = array<i64: 1>, scalar_prefetch = 0 : i64, scratch_operands = 0 : i64, tpu.core_type = #tpu.core_type<tc>, window_params = [{transform_indices = @transform_0, window_bounds = array<i64: 16, 32>}, {pipeline_mode = #tpu.pipeline_mode<synchronous>, transform_indices = @transform_1, window_bounds = array<i64: 32, 8>}, {pipeline_mode = #tpu.pipeline_mode<synchronous>, transform_indices = @transform_2, window_bounds = array<i64: 1, 8>}, {transform_indices = @transform_3, window_bounds = array<i64: 16, 8>}]} {
    %c0 = arith.constant 0 : index
    %c0_0 = arith.constant 0 : index
    %0 = vector.load %arg1[%c0, %c0_0] : memref<16x32xf32, #tpu.memory_space<vmem>>, vector<16x32xf32>
    %c0_1 = arith.constant 0 : index
    %c0_2 = arith.constant 0 : index
    %1 = vector.load %arg2[%c0_1, %c0_2] : memref<32x8xf32, #tpu.memory_space<vmem>>, vector<32x8xf32>
    %cst = arith.constant dense<0.000000e+00> : vector<16x8xf32>
    %2 = tpu.matmul %0, %1, %cst {dimension_numbers = #tpu.dot_dimension_numbers<[1], [0], [0], [1], [0, 0, 1, 1], [], []>} : vector<16x32xf32>, vector<32x8xf32>, vector<16x8xf32> -> vector<16x8xf32>
    %c0_3 = arith.constant 0 : index
    %c0_4 = arith.constant 0 : index
    %3 = vector.load %arg3[%c0_3, %c0_4] : memref<1x8xf32, #tpu.memory_space<vmem>>, vector<1x8xf32>
    %4 = vector.broadcast %3 : vector<1x8xf32> to vector<16x8xf32>
    %5 = arith.addf %2, %4 : vector<16x8xf32>
    %c0_5 = arith.constant 0 : index
    %c0_6 = arith.constant 0 : index
    %6 = vector.load %arg4[%c0_5, %c0_6] : memref<16x8xf32, #tpu.memory_space<vmem>>, vector<16x8xf32>
    tpu.vector_store %arg4[%c0_5, %c0_6], %5 {strides = array<i32>} : memref<16x8xf32, #tpu.memory_space<vmem>>, vector<16x8xf32>,
    return
  }
  func.func @transform_0(%arg0: i32) -> (i32, i32) {
    %c0_i32 = arith.constant 0 : i32
    %c0_i32_0 = arith.constant 0 : i32
    return %arg0, %c0_i32 : i32, i32
  }
  func.func @transform_1(%arg0: i32) -> (i32, i32) {
    %c0_i32 = arith.constant 0 : i32
    %c0_i32_0 = arith.constant 0 : i32
    %c0_i32_1 = arith.constant 0 : i32
    return %c0_i32, %c0_i32_0 : i32, i32
  }
  func.func @transform_2(%arg0: i32) -> (i32, i32) {
    %c0_i32 = arith.constant 0 : i32
    %c0_i32_0 = arith.constant 0 : i32
    %c0_i32_1 = arith.constant 0 : i32
    return %c0_i32, %c0_i32_0 : i32, i32
  }
  func.func @transform_3(%arg0: i32) -> (i32, i32) {
    %c0_i32 = arith.constant 0 : i32
    %c0_i32_0 = arith.constant 0 : i32
    return %arg0, %c0_i32 : i32, i32
  }
}

</mosaic_0001>

<bundles_post_ra>
// kernel: tpu_custom_call.1
= control target key start
LH: loop header
LB: loop body
LE: loop exit
PB: predicated region body
PF: predicated region fallthrough
CT: control target
= control target key end

     0   :  { %vm27_vm0 = vcmask 261120   ;;  %vm109_vm1 = vcmask 64512   ;;  %s191_s1 = inlined_call_operand.vmem [shape: f32[32,8], index: 1, kind: input, shape index: {}]   ;;  %s192_s0 = inlined_call_operand.vmem [shape: f32[16,32], index: 0, kind: input, shape index: {}]   ;;  %s193_s2 = inlined_call_operand.vmem [shape: f32[1,8], index: 2, kind: input, shape index: {}]   ;;  %s194_s3 = inlined_call_operand.vmem [shape: f32[16,8], index: 3, kind: output, shape index: {}]  }
   0x1   :  { %v16_v0 = vld [vmem:[%s191_s1] sm:$0xff]  ;;  %v17_v1 = vld [vmem:[%s191_s1 + $0x8] sm:$0xff]  ;;  %v18_v2 = vld [vmem:[%s191_s1 + $0x10] sm:$0xff] }
   0x2   :  { %v136_v3 = vpack.c.bf16 %v17_v1, %v16_v0  ;;  %v19_v4 = vld [vmem:[%s191_s1 + $0x18] sm:$0xff]  ;;  %v14_v5 = vld [vmem:[%s192_s0] sm:$0xff]  ;;  %v15_v7 = vld [vmem:[%s192_s0 + $0x8] sm:$0xff] }
   0x3   :  { %v140_v6 = vpack.c.bf16 %v19_v4, %v18_v2  ;;  %133 = vmatprep.mubr.msk.f32.mxu0 %vm27_vm0, %v14_v5  ;;  %v116_v8 = vld [vmem:[%s193_s2] ss:$0 sm:$0xff] }
   0x4   :  { %137 = vmatprep.subr.bf16.mxu0 %v136_v3 }
   0x5   :  { %139 = vmatpush3.bf16.msra.mxu0 %v136_v3 }
   0x6   :  { %141 = vmatprep.subr.bf16.mxu0 %v140_v6 }
   0x9   :  { %143 = vmatpush3.bf16.msra.mxu0 %v140_v6 }
   0xc   :  { %134 = vmatmul.mubr.msk.f32.vlgmr.msra.gmra.mrb[0].mxu0 %vm27_vm0, %v15_v7 }
  0xdf   :  { %v135_v9 = vpop.f32.mrb[0].mxu0 }
  0xe0   :  { %v106_v10 = vadd.f32 %v135_v9, %v116_v8  ;;  %v100_v11 = vpop.f32.mrb[1].mxu0 }
  0xe1   :  { %v101_v12 = vadd.f32 %v116_v8, %v100_v11 }
  0xe2   :  { %111 = vst.msk [vmem:[%s194_s3 + $0x8] sm:$0xff] %vm109_vm1, %v106_v10 }
  0xe3   :  { %110 = vst.msk [vmem:[%s194_s3] sm:$0xff] %vm109_vm1, %v101_v12 }

</bundles_post_ra>
